<compile_context>
chip_gen: v6e
topology: v6e:2x2x1
jax: 0.10.0
libtpu: 0.0.40
codegen_flags: <defaults>
</compile_context>

<pallas_src>
import functools
import numpy as np
import jax
import jax.numpy as jnp
from jax.experimental import pallas as pl
from jax.experimental.pallas import tpu as pltpu

_LANE = 128
_SUBLANE = 8


def _round_up(x, m):
    return ((x + m - 1) // m) * m


def _cdiv(a, b):
    return -(-a // b)


# ----------------------------- Pallas kernel --------------------------------

def _blur_matmul_kernel(x_ref, w_ref, o_ref):
    # x_ref: (tile_n, t_pad) rows of packed time series (time on lanes)
    # w_ref: (t_pad, t_pad) block-diagonal banded Gaussian matrix (resident)
    # o_ref: (tile_n, t_pad) lane-dense output tile (t_pad multiple of 128)
    o_ref[...] = jnp.dot(
        x_ref[...], w_ref[...], preferred_element_type=jnp.float32
    ).astype(o_ref.dtype)


# --------------------------- feature / chip probes ---------------------------

@functools.lru_cache(maxsize=1)
def _pipeline_mode_supported():
    if not hasattr(pl, "Buffered"):
        return False
    try:
        pl.BlockSpec((8, 128), lambda i: (0, 0), pipeline_mode=pl.Buffered(2))
        return True
    except Exception:
        return False


@functools.lru_cache(maxsize=1)
def _vmem_budget_bytes():
    """(usable budget, physical per-core capacity). Falls back to v7x's 64 MiB."""
    try:
        cap = int(pltpu.get_tpu_info().vmem_capacity_bytes)
    except Exception:
        cap = 64 * 1024 * 1024
    cap = min(max(cap, 16 * 1024 * 1024), 128 * 1024 * 1024)
    return (cap * 7) // 10, cap


def _block_spec(shape, index_map, bufs=None):
    if bufs is not None and _pipeline_mode_supported():
        return pl.BlockSpec(shape, index_map, pipeline_mode=pl.Buffered(bufs))
    return pl.BlockSpec(shape, index_map)


# ----------------------------- parameter setup ------------------------------

def make_gaussian_kernel_1d(kernel_size=15, sigma=1.0, dtype=np.float64):
    """Matches GaussianBlur.create_kernel(): unnormalized exp(-t^2 / (2 sigma^2))."""
    radius = kernel_size // 2
    k = np.exp(-np.square(np.arange(-radius, radius + 1)) / (2.0 * sigma ** 2))
    return np.asarray(k, dtype=dtype)


@functools.lru_cache(maxsize=16)
def _band_matrix_cached(taps, series_len, pack, t_pad, dtype_name):
    """Block-diagonal banded matrix realizing a packed zero-padded 'same' conv.

    out[n, t_out] = sum_{t_in} x[n, t_in] * W[t_in, t_out] with
    W[t_in, t_out] = taps[t_in - t_out + radius] -- exactly F.conv2d's
    cross-correlation (no kernel flip, correct even for asymmetric taps).
    `pack` copies of the (series_len, series_len) band sit along the diagonal,
    one per series packed into a lane row; all other entries are zero, which also
    realizes the conv's zero padding.  Cached so W is built / transferred once.
    """
    k = np.asarray(taps, dtype=np.float64)
    ksz = k.shape[0]
    radius = ksz // 2
    t_in = np.arange(series_len)[:, None]
    t_out = np.arange(series_len)[None, :]
    d = t_in - t_out + radius
    valid = (d >= 0) & (d < ksz)
    band = np.where(valid, k[np.clip(d, 0, ksz - 1)], 0.0)
    W = np.zeros((t_pad, t_pad), dtype=np.float64)
    for j in range(pack):
        s = j * series_len
        W[s:s + series_len, s:s + series_len] = band
    return jnp.asarray(W.astype(np.float32)).astype(dtype_name)


# ------------------------------ tiling --------------------------------------

def _choose_tiling(n_rows, t_pad, in_item, out_item, w_bufs, budget, sub_align,
                   min_steps=4):
    """Chip/VMEM-aware row tile: >= min_steps grid steps, bounded row padding."""
    per_row2 = t_pad * (2 * in_item + 2 * out_item)      # x + out, double-buffered
    w_bytes = w_bufs * t_pad * t_pad * in_item
    avail = max(budget - w_bytes, per_row2 * sub_align)
    vmem_max_rows = max(sub_align, avail // per_row2)

    k = max(min_steps, _cdiv(n_rows, vmem_max_rows))
    k = max(1, min(k, _cdiv(n_rows, sub_align)))         # never below sub_align rows
    raw = _cdiv(n_rows, k)
    # v6e/v7x MXU is 256x256: align big tiles to 256, mid to 128, small to sublanes.
    align = 256 if raw >= 256 else (128 if raw >= 128 else sub_align)
    tile_n = min(_round_up(raw, align), _round_up(n_rows, align))
    while tile_n > sub_align and (tile_n * per_row2 + w_bytes) > budget:
        tile_n = max(sub_align, tile_n - sub_align)
    n_pad = _round_up(n_rows, tile_n)
    return tile_n, n_pad, n_pad // tile_n


# ------------------------------ wrappers -------------------------------------

def gaussian_blur_series(series, kernel_1d, *, compute_dtype=jnp.float32):
    """Blur along the last axis of a series-major (N, T) array ('same', zero pad).

    Prefer this entry point when the pipeline already holds series-major data:
    it skips the (C,T,V,M) transpose copies entirely (the op is HBM-bound).
    """
    N, T = series.shape
    out_dtype = series.dtype
    in_item = np.dtype(compute_dtype).itemsize
    out_item = np.dtype(out_dtype).itemsize
    sub_align = max(_SUBLANE, 32 // in_item)   # f32: 8 rows, bf16: 16 rows

    # Short-clip packing: floor(128/T) series per 128-lane row (block-diagonal W
    # keeps them independent), so short clips don't waste lane bandwidth.
    pack = max(1, _LANE // T)
    n_srs = _round_up(N, pack)
    n_rows = n_srs // pack
    t_pack = pack * T
    t_pad = _round_up(t_pack, _LANE)

    x2 = jnp.pad(series, ((0, n_srs - N), (0, 0))).reshape(n_rows, t_pack)
    x2p = jnp.pad(x2, ((0, 0), (0, t_pad - t_pack))).astype(compute_dtype)

    taps = tuple(float(v) for v in np.asarray(kernel_1d, dtype=np.float64))
    W = _band_matrix_cached(taps, T, pack, t_pad, np.dtype(compute_dtype).name)

    pipeline_ok = _pipeline_mode_supported()
    w_bufs = 1 if pipeline_ok else 2
    budget, vmem_cap = _vmem_budget_bytes()
    tile_n, n_pad, steps = _choose_tiling(
        n_rows, t_pad, in_item, out_item, w_bufs, budget, sub_align)

    if n_pad != n_rows:
        x2p = jnp.pad(x2p, ((0, n_pad - n_rows), (0, 0)))

    # Deeper x buffering (helps v7x's fast HBM) once there are enough steps + VMEM.
    x_bufs = 2
    w_bytes = w_bufs * t_pad * t_pad * in_item
    demand3 = 3 * tile_n * t_pad * in_item + 2 * tile_n * t_pad * out_item + w_bytes
    if pipeline_ok and steps >= 3 and demand3 <= budget:
        x_bufs = 3
    demand = x_bufs * tile_n * t_pad * in_item + 2 * tile_n * t_pad * out_item + w_bytes
    vmem_limit = int(min(max((demand * 5) // 4 + (2 << 20), 16 << 20),
                         (vmem_cap * 9) // 10))

    cost = pl.CostEstimate(
        flops=2 * n_pad * t_pad * t_pad,
        transcendentals=0,
        bytes_accessed=(n_pad * t_pad * in_item          # x read
                        + n_pad * t_pad * out_item       # out write
                        + t_pad * t_pad * in_item),      # W read (resident, once)
    )

    def _call(use_pipeline_mode):
        in_specs = [
            _block_spec((tile_n, t_pad), lambda i: (i, 0),
                        bufs=x_bufs if use_pipeline_mode else None),
            _block_spec((t_pad, t_pad), lambda i: (0, 0),
                        bufs=1 if use_pipeline_mode else None),   # W single-buffered
        ]
        return pl.pallas_call(
            _blur_matmul_kernel,
            out_shape=jax.ShapeDtypeStruct((n_pad, t_pad), out_dtype),
            grid_spec=pltpu.PrefetchScalarGridSpec(
                num_scalar_prefetch=0,
                grid=(n_pad // tile_n,),
                in_specs=in_specs,
                out_specs=pl.BlockSpec((tile_n, t_pad), lambda i: (i, 0)),
            ),
            compiler_params=pltpu.CompilerParams(
                dimension_semantics=("parallel",),
                vmem_limit_bytes=vmem_limit,
            ),
            cost_estimate=cost,
        )(x2p, W)

    try:
        out_p = _call(pipeline_ok)
    except Exception:
        if not pipeline_ok:
            raise
        out_p = _call(False)   # fall back to default double-buffered specs

    # Unpack: drop row/lane padding and un-interleave packed series.
    return out_p[:n_rows, :t_pack].reshape(n_srs, T)[:N]


def gaussian_blur(x, kernel_1d, *, compute_dtype=jnp.float32):
    """x: (C, T, V, M).  Returns the blurred tensor (blur along T), same shape/dtype."""
    C, T, V, M = x.shape
    # One transpose in / one out when the caller holds (C, T, V, M); callers that
    # already have series-major data should call gaussian_blur_series() directly.
    series = jnp.transpose(x, (0, 2, 3, 1)).reshape(C * V * M, T)
    out = gaussian_blur_series(series, kernel_1d, compute_dtype=compute_dtype)
    return out.reshape(C, V, M, T).transpose(0, 3, 1, 2)


# ------------------------------ main -----------------------------------------

if __name__ == "__main__":
    # Module defaults: channels=3, kernel_size=15, sigma_range=(0.1, 2), prob=0.5
    channels, kernel_size = 3, 15
    # Deterministic stand-in for random.uniform(0.1, 2) drawn at module init.
    sigma = float(np.random.RandomState(0).uniform(0.1, 2.0))
    k1d = make_gaussian_kernel_1d(kernel_size, sigma, dtype=np.float64)

    # Small skeleton-shaped input (C, T, V, M): short NTU-style clip.
    C, T, V, M = channels, 64, 25, 2
    x = jax.random.normal(jax.random.PRNGKey(0), (C, T, V, M), dtype=jnp.float32)

    # Reference: zero-padded 'same' 1-D cross-correlation along T per (c, v, m)
    # series in float64 -- exactly what F.conv2d does in the PyTorch module.
    x_np = np.asarray(x, dtype=np.float64)
    k_np = np.asarray(k1d, dtype=np.float64)
    radius = kernel_size // 2
    ref = np.zeros_like(x_np)
    for c in range(C):
        for v in range(V):
            for m in range(M):
                padded = np.pad(x_np[c, :, v, m], (radius, radius))
                ref[c, :, v, m] = np.array(
                    [np.dot(padded[t:t + kernel_size], k_np) for t in range(T)]
                )

    # f32 path (default; matches the f64 reference tightly).
    out = jax.block_until_ready(gaussian_blur(x, k1d))
    assert out.shape == (C, T, V, M)
    np.testing.assert_allclose(np.asarray(out), ref, rtol=1e-4, atol=1e-4)

    # bf16 MXU path (the v5e-friendly fast path): same kernel, looser tolerance.
    out_bf16 = jax.block_until_ready(
        gaussian_blur(x, k1d, compute_dtype=jnp.bfloat16))
    np.testing.assert_allclose(np.asarray(out_bf16), ref, rtol=5e-2, atol=5e-2)

    print("KERNEL_OK")
</pallas_src>

<mosaic_0001>
module attributes {stable_mosaic.version = 11 : i64} {
  func.func @_blur_matmul_kernel(%arg0: i32, %arg1: memref<24x128xf32, #tpu.memory_space<vmem>>, %arg2: memref<128x128xf32, #tpu.memory_space<vmem>>, %arg3: memref<24x128xf32, #tpu.memory_space<vmem>>) attributes {dimension_semantics = [#tpu.dimension_semantics<parallel>], iteration_bounds = array<i64: 4>, scalar_prefetch = 0 : i64, scratch_operands = 0 : i64, tpu.core_type = #tpu.core_type<tc>, window_params = [{transform_indices = @transform_0, window_bounds = array<i64: 24, 128>}, {pipeline_mode = #tpu.pipeline_mode<synchronous>, transform_indices = @transform_1, window_bounds = array<i64: 128, 128>}, {transform_indices = @transform_2, window_bounds = array<i64: 24, 128>}]} {
    %c0 = arith.constant 0 : index
    %c0_0 = arith.constant 0 : index
    %0 = vector.load %arg1[%c0, %c0_0] : memref<24x128xf32, #tpu.memory_space<vmem>>, vector<24x128xf32>
    %c0_1 = arith.constant 0 : index
    %c0_2 = arith.constant 0 : index
    %1 = vector.load %arg2[%c0_1, %c0_2] : memref<128x128xf32, #tpu.memory_space<vmem>>, vector<128x128xf32>
    %cst = arith.constant dense<0.000000e+00> : vector<24x128xf32>
    %2 = tpu.matmul %0, %1, %cst {dimension_numbers = #tpu.dot_dimension_numbers<[1], [0], [0], [1], [0, 0, 1, 1], [], []>} : vector<24x128xf32>, vector<128x128xf32>, vector<24x128xf32> -> vector<24x128xf32>
    %c0_3 = arith.constant 0 : index
    %c0_4 = arith.constant 0 : index
    %3 = vector.load %arg3[%c0_3, %c0_4] : memref<24x128xf32, #tpu.memory_space<vmem>>, vector<24x128xf32>
    tpu.vector_store %arg3[%c0_3, %c0_4], %2 {strides = array<i32>} : memref<24x128xf32, #tpu.memory_space<vmem>>, vector<24x128xf32>,
    return
  }
  func.func @transform_0(%arg0: i32) -> (i32, i32) {
    %c0_i32 = arith.constant 0 : i32
    %c0_i32_0 = arith.constant 0 : i32
    return %arg0, %c0_i32 : i32, i32
  }
  func.func @transform_1(%arg0: i32) -> (i32, i32) {
    %c0_i32 = arith.constant 0 : i32
    %c0_i32_0 = arith.constant 0 : i32
    %c0_i32_1 = arith.constant 0 : i32
    return %c0_i32, %c0_i32_0 : i32, i32
  }
  func.func @transform_2(%arg0: i32) -> (i32, i32) {
    %c0_i32 = arith.constant 0 : i32
    %c0_i32_0 = arith.constant 0 : i32
    return %arg0, %c0_i32 : i32, i32
  }
}

</mosaic_0001>

<bundles_post_ra>
// kernel: tpu_custom_call.1
= control target key start
LH: loop header
LB: loop body
LE: loop exit
PB: predicated region body
PF: predicated region fallthrough
CT: control target
= control target key end

     0   :  { %7 = vsyncpa [#allocation3], 0  ;;  %s923_s0 = inlined_call_operand.hbm [shape: f32[96,128], index: 0, kind: input, shape index: {}]   ;;  %s924_s1 = inlined_call_operand.hbm [shape: f32[128,128], index: 1, kind: input, shape index: {}]   ;;  %s925_s2 = inlined_call_operand.hbm [shape: f32[96,128], index: 2, kind: output, shape index: {}]  }
   0x1   :  { %9 = vsyncpa [#allocation3 + $0x1], 0 }
   0x2   :  { %10 = vsyncpa [#allocation6], 0 }
   0x3   :  { %11 = vsyncpa [#allocation4], 0 }
   0x4   :  { %13 = vsyncpa [#allocation4 + $0x1], 0  ;;  %s695_s9 = smov 0   ;;  %s697_s10 = smov 0  }
   0x5   :  { %s699_s11 = smov 0   ;;  %s701_s12 = smov 0  }
   0x6 LB: > { %s716_s13 = sadd.s32 4294967295, %s669_s12   ;;  %s378_s14 = sadd.s32 4294967294, %s669_s12   ;;  %s669_s12 = sphi %s701_s12, %s946_s12   ;;  %s665_s11 = sphi %s699_s11, %s945_s11   ;;  %s661_s10 = sphi %s697_s10, %s944_s10   ;;  %s657_s9 = sphi %s695_s9, %s943_s9  }
   0x7   : > { %p39_p0 = scmp.ne.s32.totalorder %s661_s10, %s657_s9  ;;  %p926_p1 = scmp.eq.s32.totalorder %s716_s13, 0 }
   0x8   : > { %p90_p3 = scmp.eq.s32.totalorder %s378_s14, 3  ;;  %p379_p5 = scmp.ge.s32.totalorder %s669_s12, 1 }
   0x9   : > { %p725_p4 = por %p926_p1, %p39_p0  ;;  %p97_p7 = scmp.lt.s32.totalorder %s669_s12, 5 }
   0xa   : > { %p730_p6 = por %p90_p3, %p39_p0  ;;  %s671_s18 = smov [#allocation5]  }
   0xb   : > { %s930_s15 = scalar_select %p725_p4, 1, 0 }
   0xc   : > { %s931_s16 = scalar_select %p730_p6, 1, 0 }
   0xd   : > { %p735_p8 = pnand %p379_p5, %p97_p7  ;;  %s109_s19 = sshll.u32 %s671_s18, 4  ;;  %s110_s19 = int_to_ptr.vmem [resolvable:$true] %s109_s19 }
   0xe   : > { %s748_s21 = sadd.s32 1, %s669_s12   ;;  %s26_s22 = sadd.s32 1, %s665_s11 }
   0xf   : > { %s932_s17 = scalar_select %p735_p8, 1, 0 }
  0x10   : > { %p492_p9 = pneg %p735_p8  ;;  %s23_s23 = ssub.s32 %s669_s12, %s748_s21 }
  0x11   : > { %s558_s24 = scalar_lea.vmem %s110_s19, 2048  ;;  %p566_p3 = scmp.lt.s32.totalorder %s110_s19, %s110_s19 }
  0x12   : > { %p743_p10 = pnand %p492_p9, %p926_p1  ;;  %p559_p12 = scmp.ne.s32.totalorder %s110_s19, %s558_s24 }
  0x13   : > { %p567_p5 = scmp.lt.s32.totalorder %s558_s24, %s558_s24 }
  0x14   : > { %p549_p11 = pneg %p743_p10 }
  0x15   : > { %p568_p7 = por %p567_p5, %p566_p3 }
  0x16   : > { %p561_p13 = pnand %p559_p12, %p549_p11 }
  0x18   : > { %p562_p0 = pneg %p561_p13 }
  0x1a   : > { %p569_p2 = pnand %p568_p7, %p562_p0 }
  0x1c   : > { %572 = shalt.err (!%p569_p2)
}
  0x1d   : > { %s672_s25 = smov 128   ;;  %s673_s26 = smov 8  }
  0x1e   : > { %495 = dma.hbm_to_vmem [thread:$0]  (!%p743_p10), %s924_s1, 2048, %s110_s19, [#allocation6], %s672_s25, %s672_s25, %s673_s26  }
  0x1f   : > { %p24_p2 = scmp.eq.s32.totalorder %s23_s23, 0  ;;  %p33_p9 = scmp.ne.s32.totalorder %s665_s11, %s661_s10 }
  0x20   : > { %p34_p11 = scmp.eq.s32.totalorder %s669_s12, 0  ;;  %p505_p12 = scmp.lt.s32.totalorder %s669_s12, 4 }
  0x21   : > { %s768_s29 = scalar_select %p24_p2, %s665_s11, %s26_s22  }
  0x22   : > { %p35_p13 = por %p34_p11, %p33_p9  ;;  %p934_p0 = scmp.eq.s32.totalorder %s716_s13, 3 }
  0x23   : > { %s123_s3 = sand.u32 1, %s665_s11   ;;  %s388_s4 = smul.u32 384, %s669_s12 }
  0x24   : > { %p772_p3 = por %p934_p0, %p33_p9  ;;  %s482_s5 = smul.u32 24, %s123_s3 }
  0x25   : > { %p778_p5 = pnand %p505_p12, %p35_p13  ;;  %s785_s14 = scalar_lea.hbm %s923_s0, %s388_s4 }
  0x26   : > { %s935_s30 = scalar_select %p772_p3, 1, 0 }
  0x27   : > { %s127_s18 = scalar_lea.vmem [#allocation2], %s482_s5  ;;  %s789_s20 = scalar_lea.sflag [#allocation3], %s123_s3 }
  0x28   : > { %s134_s19 = sshll.u32 %s127_s18, 4  ;;  %s573_s22 = scalar_lea.hbm %s785_s14, 384  ;;  %s787_s19 = int_to_ptr.vmem [resolvable:$true] %s134_s19 }
  0x29   : > { %p574_p10 = scmp.ne.s32.totalorder %s785_s14, %s573_s22  ;;  %p575_p7 = pneg %p778_p5 }
  0x2a   : > { %s578_s27 = scalar_lea.hbm %s923_s0, 1536  ;;  %p579_p11 = scmp.lt.s32.totalorder %s785_s14, %s923_s0 }
  0x2b   : > { %p576_p2 = pnand %p575_p7, %p574_p10  ;;  %p580_p12 = scmp.lt.s32.totalorder %s578_s27, %s573_s22 }
  0x2d   : > { %p577_p9 = pneg %p576_p2  ;;  %p581_p13 = por %p580_p12, %p579_p11 }
  0x2f   : > { %p582_p0 = pnand %p581_p13, %p577_p9 }
  0x31   : > { %585 = shalt.err (!%p582_p0)
}
  0x32   : > { %s586_s3 = scalar_lea.vmem %s787_s19, 384  ;;  %s674_s5 = smov [#allocation2]  }
  0x33   : > { %p587_p1 = scmp.ne.s32.totalorder %s787_s19, %s586_s3  ;;  %s591_s7 = sshll.u32 %s674_s5, 4  ;;  %s592_s7 = int_to_ptr.vmem [resolvable:$false] %s591_s7 }
  0x34   : > { %s593_s8 = scalar_lea.vmem %s592_s7, 768  ;;  %p594_p2 = scmp.lt.s32.totalorder %s787_s19, %s592_s7 }
  0x35   : > { %p589_p6 = pnand %p587_p1, %p575_p7  ;;  %p595_p3 = scmp.lt.s32.totalorder %s593_s8, %s586_s3 }
  0x37   : > { %p590_p10 = pneg %p589_p6  ;;  %p596_p4 = por %p595_p3, %p594_p2 }
  0x39   : > { %p597_p8 = pnand %p596_p4, %p590_p10 }
  0x3b   : > { %600 = shalt.err (!%p597_p8)
}
  0x3c   : > { %499 = dma.hbm_to_vmem [thread:$0]  (!%p778_p5), %s785_s14, 384, %s787_s19, %s789_s20, %s672_s25, %s672_s25, %s673_s26  }
  0x3d   : > { %p937_p1 = scmp.ne.s32.totalorder %s932_s17, 0 }
  0x3e   : > { %s816_s18 = sand.u32 (!%p937_p1), 1, %s661_s10   ;;  %p938_p4 = scmp.ne.s32.totalorder (!%p937_p1), %s930_s15, 0 }
  0x3f   : > { %146 = sbr.rel (%p937_p1) target bundleno = 318 (0x13e), region = 28  ;;  %s149_s23 = scalar_lea.sflag (!%p937_p1), [#allocation3], %s816_s18 }
  0x40   : > { %s483_s22 = smul.u32 (!%p937_p1), 24, %s816_s18 }
  0x42   : > { %s822_s6 = scalar_lea.vmem (!%p937_p1), [#allocation2], %s483_s22 }
  0x44   : > { %644 = dma.done.wait (%p938_p4), %s149_s23, 384  }
  0x45   : > { %646 = vsyncadd (%p938_p4), %s149_s23, 4294966912  ;;  %p939_p6 = scmp.eq.s32.totalorder %s716_s13, 0 }
  0x47   : > { %648 = dma.done.wait (%p939_p6), [#allocation6], 2048   ;;  %p940_p8 = pmov %p939_p6 }
  0x48   : > { %v675_v0 = vmov 0.0   ;;  %vm676_vm0 = vmmov 0   ;;  %v197_v1 = vld [vmem:[#allocation5 + $0x78] sm:$0xff]  ;;  %v196_v2 = vld [vmem:[#allocation5 + $0x70] sm:$0xff]  ;;  %v195_v3 = vld [vmem:[#allocation5 + $0x68] sm:$0xff]  ;;  %s176_s15 = scalar_lea.vmem [#allocation7], %s483_s22 }
  0x49   : > { %650 = vsyncadd (%p940_p8), [#allocation6], 4294965248  ;;  %450 = vmatprep.subr.mxu1 %v675_v0  ;;  %409 = vmatprep.subr.mxu0 %v675_v0  ;;  %v194_v4 = vld [vmem:[#allocation5 + $0x60] sm:$0xff]  ;;  %v193_v5 = vld [vmem:[#allocation5 + $0x58] sm:$0xff]  ;;  %s295_s17 = sshll.u32 %s176_s15, 4  ;;  %s389_s25 = smul.u32 384, %s716_s13  ;;  %s876_s17 = int_to_ptr.vmem [resolvable:$true] %s295_s17 }
  0x4a   : > { %444 = vmatprep.mubr.msk.f32.mxu1 %vm676_vm0, %v675_v0  ;;  %441 = vmatprep.mubr.msk.f32.mxu0 %vm676_vm0, %v675_v0  ;;  %v192_v6 = vld [vmem:[#allocation5 + $0x50] sm:$0xff]  ;;  %v191_v7 = vld [vmem:[#allocation5 + $0x48] sm:$0xff]  ;;  %v190_v8 = vld [vmem:[#allocation5 + $0x40] sm:$0xff]  ;;  %s282_s13 = scalar_lea.sflag [#allocation4], %s816_s18  ;;  %s601_s20 = scalar_lea.vmem %s876_s17, 384 }
  0x4b   : > { %466 = vmatpush3.msra.mxu1 %v197_v1  ;;  %410 = vmatpush3.msra.mxu0 %v197_v1  ;;  %v189_v9 = vld [vmem:[#allocation5 + $0x38] sm:$0xff]  ;;  %v188_v10 = vld [vmem:[#allocation5 + $0x30] sm:$0xff]  ;;  %v187_v11 = vld [vmem:[#allocation5 + $0x28] sm:$0xff]  ;;  %s881_s19 = scalar_lea.hbm %s925_s2, %s389_s25  ;;  %p602_p3 = scmp.ne.s32.totalorder %s876_s17, %s601_s20 }
  0x4c   : > { %451 = vmatprep.subr.mxu1 %v675_v0  ;;  %411 = vmatprep.subr.mxu0 %v675_v0  ;;  %v186_v12 = vld [vmem:[#allocation5 + $0x20] sm:$0xff]  ;;  %v185_v13 = vld [vmem:[#allocation5 + $0x18] sm:$0xff]  ;;  %v184_v14 = vld [vmem:[#allocation5 + $0x10] sm:$0xff]  ;;  %p941_p5 = scmp.ne.s32.totalorder %s935_s30, 0  ;;  %s677_s24 = smov [#allocation7]  }
  0x4d   : > { %467 = vmatpush3.msra.mxu1 %v196_v2  ;;  %412 = vmatpush3.msra.mxu0 %v196_v2  ;;  %v183_v15 = vld [vmem:[#allocation5 + $0x8] sm:$0xff]  ;;  %v182_v16 = vld [vmem:[#allocation5] sm:$0xff]  ;;  %v180_v17 = vld [vmem:[%s822_s6 + $0x8] sm:$0xff]  ;;  %s605_s27 = sshll.u32 %s677_s24, 4  ;;  %s606_s27 = int_to_ptr.vmem [resolvable:$false] %s605_s27 }
  0x4e   : > { %452 = vmatprep.subr.mxu1 %v675_v0  ;;  %413 = vmatprep.subr.mxu0 %v675_v0  ;;  %v179_v18 = vld [vmem:[%s822_s6] sm:$0xff]  ;;  %v181_v19 = vld [vmem:[%s822_s6 + $0x10] sm:$0xff]  ;;  %p603_p7 = pnand %p602_p3, %p941_p5  ;;  %s607_s28 = scalar_lea.vmem %s606_s27, 768 }
  0x4f   : > { %468 = vmatpush3.msra.mxu1 %v195_v3  ;;  %414 = vmatpush3.msra.mxu0 %v195_v3  ;;  %p608_p11 = scmp.lt.s32.totalorder %s876_s17, %s606_s27  ;;  %p609_p12 = scmp.lt.s32.totalorder %s607_s28, %s601_s20 }
  0x50   : > { %453 = vmatprep.subr.mxu1 %v675_v0  ;;  %415 = vmatprep.subr.mxu0 %v675_v0  ;;  %p604_p9 = pneg %p603_p7 }
  0x51   : > { %469 = vmatpush3.msra.mxu1 %v194_v4  ;;  %416 = vmatpush3.msra.mxu0 %v194_v4  ;;  %p610_p13 = por %p609_p12, %p608_p11 }
  0x52   : > { %454 = vmatprep.subr.mxu1 %v675_v0  ;;  %417 = vmatprep.subr.mxu0 %v675_v0 }
  0x53   : > { %470 = vmatpush3.msra.mxu1 %v193_v5  ;;  %418 = vmatpush3.msra.mxu0 %v193_v5  ;;  %p611_p0 = pnand %p610_p13, %p604_p9 }
  0x54   : > { %455 = vmatprep.subr.mxu1 %v675_v0  ;;  %419 = vmatprep.subr.mxu0 %v675_v0 }
  0x55   : > { %471 = vmatpush3.msra.mxu1 %v192_v6  ;;  %420 = vmatpush3.msra.mxu0 %v192_v6 }
  0x56   : > { %456 = vmatprep.subr.mxu1 %v675_v0  ;;  %421 = vmatprep.subr.mxu0 %v675_v0 }
  0x57   : > { %472 = vmatpush3.msra.mxu1 %v191_v7  ;;  %422 = vmatpush3.msra.mxu0 %v191_v7 }
  0x58   : > { %457 = vmatprep.subr.mxu1 %v675_v0  ;;  %423 = vmatprep.subr.mxu0 %v675_v0 }
  0x59   : > { %473 = vmatpush3.msra.mxu1 %v190_v8  ;;  %424 = vmatpush3.msra.mxu0 %v190_v8 }
  0x5a   : > { %458 = vmatprep.subr.mxu1 %v675_v0  ;;  %425 = vmatprep.subr.mxu0 %v675_v0 }
  0x5b   : > { %474 = vmatpush3.msra.mxu1 %v189_v9  ;;  %426 = vmatpush3.msra.mxu0 %v189_v9 }
  0x5c   : > { %459 = vmatprep.subr.mxu1 %v675_v0  ;;  %427 = vmatprep.subr.mxu0 %v675_v0 }
  0x5d   : > { %475 = vmatpush3.msra.mxu1 %v188_v10  ;;  %428 = vmatpush3.msra.mxu0 %v188_v10 }
  0x5e   : > { %460 = vmatprep.subr.mxu1 %v675_v0  ;;  %429 = vmatprep.subr.mxu0 %v675_v0 }
  0x5f   : > { %476 = vmatpush3.msra.mxu1 %v187_v11  ;;  %430 = vmatpush3.msra.mxu0 %v187_v11 }
  0x60   : > { %461 = vmatprep.subr.mxu1 %v675_v0  ;;  %431 = vmatprep.subr.mxu0 %v675_v0 }
  0x61   : > { %477 = vmatpush3.msra.mxu1 %v186_v12  ;;  %432 = vmatpush3.msra.mxu0 %v186_v12 }
  0x62   : > { %462 = vmatprep.subr.mxu1 %v675_v0  ;;  %433 = vmatprep.subr.mxu0 %v675_v0 }
  0x63   : > { %478 = vmatpush3.msra.mxu1 %v185_v13  ;;  %434 = vmatpush3.msra.mxu0 %v185_v13 }
  0x64   : > { %463 = vmatprep.subr.mxu1 %v675_v0  ;;  %435 = vmatprep.subr.mxu0 %v675_v0 }
  0x65   : > { %479 = vmatpush3.msra.mxu1 %v184_v14  ;;  %436 = vmatpush3.msra.mxu0 %v184_v14 }
  0x66   : > { %464 = vmatprep.subr.mxu1 %v675_v0  ;;  %437 = vmatprep.subr.mxu0 %v675_v0 }
  0x67   : > { %480 = vmatpush3.msra.mxu1 %v183_v15  ;;  %438 = vmatpush3.msra.mxu0 %v183_v15 }
  0x68   : > { %465 = vmatprep.subr.mxu1 %v675_v0  ;;  %439 = vmatprep.subr.mxu0 %v675_v0 }
  0x69   : > { %481 = vmatpush3.msra.mxu1 %v182_v16  ;;  %440 = vmatpush3.msra.mxu0 %v182_v16 }
  0x6a   : > { %445 = vmatmul.mubr.f32.vlgmr.msra.gmra.mxu1 %v180_v17  ;;  %442 = vmatmul.mubr.f32.vlgmr.msra.gmra.mxu0 %v179_v18 }
  0x6b   : > { %447 = vmatprep.mubr.msk.f32.mxu1 %vm676_vm0, %v675_v0 }
  0x6e   : > { %448 = vmatmul.mubr.f32.gmra.mxu1 %v181_v19 }
 0x12a   : > { %v269_v20 = vpop.f32.mrf.mxu1  ;;  %v264_v21 = vpop.f32.mrf.mxu0 }
 0x12b   : > { %279 = vst [vmem:[%s176_s15 + $0x8] sm:$0xff] %v269_v20  ;;  %278 = vst [vmem:[%s176_s15] sm:$0xff] %v264_v21 }
 0x12c   : > { %v446_v22 = vpop.f32.mrf.mxu1  ;;  %v443_v23 = vpop.f32.mrf.mxu0 }
 0x12e   : > { %v274_v24 = vpop.f32.mrf.mxu1 }
 0x12f   : > { %280 = vst [vmem:[%s176_s15 + $0x10] sm:$0xff] %v274_v24 }
 0x130   : > { %v449_v25 = vpop.f32.mrf.mxu1 }
 0x131   : > { %614 = shalt.err (!%p611_p0)
}
 0x132   : > { %s615_s4 = scalar_lea.hbm %s881_s19, 384  ;;  %s619_s7 = scalar_lea.hbm %s925_s2, 1536 }
 0x133   : > { %p616_p10 = scmp.ne.s32.totalorder %s881_s19, %s615_s4  ;;  %p620_p4 = scmp.lt.s32.totalorder %s881_s19, %s925_s2 }
 0x134   : > { %p621_p6 = scmp.lt.s32.totalorder %s619_s7, %s615_s4 }
 0x135   : > { %p617_p2 = pnand %p616_p10, %p941_p5 }
 0x136   : > { %p622_p8 = por %p621_p6, %p620_p4 }
 0x137   : > { %p618_p1 = pneg %p617_p2 }
 0x139   : > { %p623_p3 = pnand %p622_p8, %p618_p1 }
 0x13b   : > { %626 = shalt.err (!%p623_p3)
}
 0x13c   : > { %s678_s23 = smov 128   ;;  %s679_s6 = smov 8  }
 0x13d   : > { %490 = dma.vmem_to_hbm [thread:$0]  (%p941_p5), %s876_s17, 384, %s881_s19, %s282_s13, %s678_s23, %s678_s23, %s679_s6  }
 0x13e PF: > { %p507_p7 = scmp.ge.s32.totalorder %s669_s12, 2  ;;  %s310_s15 = sand.u32 1, %s657_s9  }
 0x13f   : > { %p942_p9 = scmp.ne.s32.totalorder %s931_s16, 0  ;;  %s311_s25 = scalar_lea.sflag [#allocation4], %s310_s15 }
 0x141   : > { %p501_p11 = pnand %p507_p7, %p942_p9 }
 0x143   : > { %p502_p12 = pneg %p501_p11 }
 0x145   : > { %652 = dma.done.wait (%p502_p12), %s311_s25, 384  }
 0x146   : > { %654 = vsyncadd (%p502_p12), %s311_s25, 4294966912  ;;  %p16_p13 = scmp.ge.s32.totalorder %s748_s21, 6   ;;  %s943_s9 = smov %s661_s10 }
 0x147   : > { %s944_s10 = smov %s665_s11  ;;  %s945_s11 = smov %s768_s29 }
 0x148   : > { %s946_s12 = smov %s748_s21  ;;  %18 = sbr.rel (!%p16_p13) target bundleno = 6 (0x6), region = 77 }
 0x14d   :  { %316 = vsyncpa [#allocation3], 1 }
 0x14e   :  { %318 = vsyncpa [#allocation3 + $0x1], 1 }
 0x14f   :  { %319 = vsyncpa [#allocation6], 1 }
 0x150   :  { %320 = vsyncpa [#allocation4], 1 }
 0x151   :  { %322 = vsyncpa [#allocation4 + $0x1], 1 }

</bundles_post_ra>
